<compile_context>
chip_gen: v7x
topology: tpu7x:2x2x1
jax: 0.10.0
libtpu: 0.0.40
codegen_flags: <defaults>
</compile_context>

<pallas_src>
import functools

import jax
import jax.numpy as jnp
from jax.experimental import pallas as pl
from jax.experimental.pallas import tpu as pltpu

_LANE = 128
_TARGET_BLOCK_BYTES = 4 * 1024 * 1024    # per-step input block (~HBM-roofline territory)
_MAX_WORKING_SET = 24 * 1024 * 1024      # double-buffered in+out, safe on v7x's 64 MiB VMEM


def _round_up(v, m):
    return ((v + m - 1) // m) * m


def _round_down(v, m):
    return (v // m) * m


# ----------------------------------------------------------------------------
# Kernels
# ----------------------------------------------------------------------------
def _normalize_full_t_kernel(x_ref, o_ref, *, approx):
    """Single-pass: full T column resident in the block, per-column min/max + scale."""
    x = x_ref[...]                                    # (T, tile_b), x.dtype
    maxima = jnp.max(x, axis=0, keepdims=True)        # (1, tile_b)
    minima = jnp.min(x, axis=0, keepdims=True)        # (1, tile_b)
    # Only the tiny (1, tile_b) range is upcast to f32; one reciprocal per column
    # replaces T*tile_b divides.  approx=True (EUP vrcp) is used only for bf16
    # outputs; f32 outputs take the exact reciprocal path.
    rng = (maxima - minima).astype(jnp.float32)
    inv = pl.reciprocal(rng, approx=approx).astype(x.dtype)
    # Broadcast ops stay in x.dtype (bf16-native VPU on v6e/v7x; v5e upcasts anyway),
    # avoiding a full f32 temporary of the (T, tile_b) tile.
    o_ref[...] = ((x - minima) * inv).astype(o_ref.dtype)


def _minmax_kernel(x_ref, min_ref, max_ref, *, total_t, tile_t):
    """Two-pass, pass 1: accumulate per-column min/max across the T grid axis."""
    t = pl.program_id(1)
    x = x_ref[...]                                    # (tile_t, tile_b)
    # Mask rows beyond T (partial last T tile reads unspecified data).
    row = jax.lax.broadcasted_iota(jnp.int32, x.shape, 0)
    valid = (t * tile_t + row) < total_t
    pos_inf = jnp.asarray(jnp.inf, dtype=x.dtype)
    neg_inf = jnp.asarray(-jnp.inf, dtype=x.dtype)
    cur_min = jnp.min(jnp.where(valid, x, pos_inf), axis=0, keepdims=True)
    cur_max = jnp.max(jnp.where(valid, x, neg_inf), axis=0, keepdims=True)

    @pl.when(t == 0)
    def _():
        min_ref[...] = cur_min
        max_ref[...] = cur_max

    @pl.when(t > 0)
    def _():
        min_ref[...] = jnp.minimum(min_ref[...], cur_min)
        max_ref[...] = jnp.maximum(max_ref[...], cur_max)


def _normalize_with_stats_kernel(x_ref, min_ref, max_ref, o_ref, *, approx):
    """Two-pass, pass 2: normalize a (tile_t, tile_b) tile with precomputed stats."""
    x = x_ref[...]
    minima = min_ref[...]                              # (1, tile_b)
    maxima = max_ref[...]                              # (1, tile_b)
    rng = (maxima - minima).astype(jnp.float32)
    inv = pl.reciprocal(rng, approx=approx).astype(x.dtype)
    o_ref[...] = ((x - minima) * inv).astype(o_ref.dtype)


# ----------------------------------------------------------------------------
# Wrapper
# ----------------------------------------------------------------------------
def regression_normalized(x, *, tile_b=None, two_pass=None):
    """Normalize x of shape (T, B) to [0, 1] along axis 0, per column."""
    T, B = x.shape
    itemsize = jnp.dtype(x.dtype).itemsize
    approx = jnp.dtype(x.dtype) == jnp.bfloat16
    B_lane = _round_up(B, _LANE)

    # Single-pass needs the full (T, 128) column block (double-buffered in+out) to
    # fit the working-set budget; otherwise fall back to the two-pass scheme.
    if two_pass is None:
        two_pass = 4 * T * _LANE * itemsize > _MAX_WORKING_SET

    if not two_pass:
        # ------------------- single pass: grid over B only -------------------
        if tile_b is None:
            tb = _TARGET_BLOCK_BYTES // max(T * itemsize, 1)
            tb = max(_LANE, _round_down(tb, _LANE))
            while 4 * T * tb * itemsize > _MAX_WORKING_SET and tb > _LANE:
                tb -= _LANE
            tile_b = tb
        else:
            tile_b = max(_LANE, _round_down(tile_b, _LANE))
        # v7x megacore: keep >= 4 (or >= 2) grid steps when B allows so both
        # TensorCores get work under the "parallel" sharding.
        if B_lane >= 4 * _LANE:
            tile_b = min(tile_b, max(_LANE, _round_down(B_lane // 4, _LANE)))
        elif B_lane >= 2 * _LANE:
            tile_b = min(tile_b, max(_LANE, _round_down(B_lane // 2, _LANE)))
        tile_b = min(tile_b, B_lane)

        grid = (pl.cdiv(B, tile_b),)
        block_bytes = T * tile_b * itemsize
        vmem_limit = int(min(48 << 20,
                             max(8 << 20, (4 * block_bytes * 3) // 2 + (1 << 20))))

        cost = pl.CostEstimate(
            flops=5 * T * B,                      # min/max compares + sub + mul
            transcendentals=0,
            bytes_accessed=2 * T * B * itemsize,  # one read + one write of x
        )

        return pl.pallas_call(
            functools.partial(_normalize_full_t_kernel, approx=approx),
            out_shape=jax.ShapeDtypeStruct((T, B), x.dtype),
            grid_spec=pltpu.PrefetchScalarGridSpec(
                num_scalar_prefetch=0,
                grid=grid,
                in_specs=[pl.BlockSpec((T, tile_b), lambda j: (0, j))],
                out_specs=pl.BlockSpec((T, tile_b), lambda j: (0, j)),
            ),
            compiler_params=pltpu.CompilerParams(
                dimension_semantics=("parallel",),
                vmem_limit_bytes=vmem_limit,
            ),
            cost_estimate=cost,
        )(x)

    # ------------------- two-pass fallback for very long T -------------------
    sub = 8 if itemsize >= 4 else 16
    if tile_b is None:
        tile_b = min(B_lane, 4 * _LANE)
    else:
        tile_b = min(max(_LANE, _round_down(tile_b, _LANE)), B_lane)
    tile_t = _TARGET_BLOCK_BYTES // max(tile_b * itemsize, 1)
    tile_t = max(sub, _round_down(tile_t, sub))
    tile_t = min(tile_t, _round_up(T, sub))
    while 4 * tile_t * tile_b * itemsize > _MAX_WORKING_SET and tile_t > sub:
        tile_t -= sub

    grid_b = pl.cdiv(B, tile_b)
    grid_t = pl.cdiv(T, tile_t)
    block_bytes = tile_t * tile_b * itemsize
    vmem_limit = int(min(48 << 20,
                         max(8 << 20, (4 * block_bytes * 3) // 2 + (1 << 20))))

    # Pass 1: per-column min/max.  Reduction axis T is last in the grid and marked
    # "arbitrary"; the (1, B) stats blocks stay resident across it.
    minima, maxima = pl.pallas_call(
        functools.partial(_minmax_kernel, total_t=T, tile_t=tile_t),
        out_shape=(jax.ShapeDtypeStruct((1, B), x.dtype),
                   jax.ShapeDtypeStruct((1, B), x.dtype)),
        grid_spec=pltpu.PrefetchScalarGridSpec(
            num_scalar_prefetch=0,
            grid=(grid_b, grid_t),
            in_specs=[pl.BlockSpec((tile_t, tile_b), lambda j, t: (t, j))],
            out_specs=(pl.BlockSpec((1, tile_b), lambda j, t: (0, j)),
                       pl.BlockSpec((1, tile_b), lambda j, t: (0, j))),
        ),
        compiler_params=pltpu.CompilerParams(
            dimension_semantics=("parallel", "arbitrary"),
            vmem_limit_bytes=vmem_limit,
        ),
        cost_estimate=pl.CostEstimate(
            flops=2 * T * B,
            transcendentals=0,
            bytes_accessed=T * B * itemsize + 2 * B * itemsize,
        ),
    )(x)

    # Pass 2: normalize every tile with the broadcast stats; both axes independent.
    return pl.pallas_call(
        functools.partial(_normalize_with_stats_kernel, approx=approx),
        out_shape=jax.ShapeDtypeStruct((T, B), x.dtype),
        grid_spec=pltpu.PrefetchScalarGridSpec(
            num_scalar_prefetch=0,
            grid=(grid_b, grid_t),
            in_specs=[pl.BlockSpec((tile_t, tile_b), lambda j, t: (t, j)),
                      pl.BlockSpec((1, tile_b), lambda j, t: (0, j)),
                      pl.BlockSpec((1, tile_b), lambda j, t: (0, j))],
            out_specs=pl.BlockSpec((tile_t, tile_b), lambda j, t: (t, j)),
        ),
        compiler_params=pltpu.CompilerParams(
            dimension_semantics=("parallel", "parallel"),
            vmem_limit_bytes=vmem_limit,
        ),
        cost_estimate=pl.CostEstimate(
            flops=3 * T * B,
            transcendentals=0,
            bytes_accessed=2 * T * B * itemsize + 2 * B * itemsize,
        ),
    )(x, minima, maxima)


if __name__ == "__main__":
    key = jax.random.PRNGKey(0)
    k0, k1 = jax.random.split(key)

    # Small (T, B) consistent with forward(x: (T, B)); B not a multiple of 128 so the
    # masked-partial-tile path is exercised (no pad / slice passes).
    T, B = 16, 32
    x = jax.random.normal(k0, (T, B), dtype=jnp.float32) * 3.0 + 1.5
    out = jax.block_until_ready(regression_normalized(x))

    maxima = jnp.max(x, axis=0)
    minima = jnp.min(x, axis=0)
    ref = (x - minima) / (maxima - minima)
    assert out.shape == (T, B)
    assert out.dtype == x.dtype
    assert jnp.allclose(out, ref, atol=1e-6, rtol=1e-5)

    # Also exercise the large-T two-pass fallback (forced) at a small shape.
    T2, B2 = 40, 200
    x2 = jax.random.normal(k1, (T2, B2), dtype=jnp.float32) * 2.0 - 0.5
    out2 = jax.block_until_ready(regression_normalized(x2, two_pass=True))
    ref2 = (x2 - jnp.min(x2, axis=0)) / (jnp.max(x2, axis=0) - jnp.min(x2, axis=0))
    assert out2.shape == (T2, B2)
    assert jnp.allclose(out2, ref2, atol=1e-6, rtol=1e-5)

    print("KERNEL_OK")
</pallas_src>

<mosaic_0001>
module attributes {stable_mosaic.version = 11 : i64} {
  func.func @_normalize_full_t_kernel(%arg0: i32, %arg1: memref<16x128xf32, #tpu.memory_space<vmem>>, %arg2: memref<16x128xf32, #tpu.memory_space<vmem>>) attributes {dimension_semantics = [#tpu.dimension_semantics<parallel>], iteration_bounds = array<i64: 1>, scalar_prefetch = 0 : i64, scratch_operands = 0 : i64, tpu.core_type = #tpu.core_type<tc>, window_params = [{transform_indices = @transform_0, window_bounds = array<i64: 16, 128>}, {transform_indices = @transform_1, window_bounds = array<i64: 16, 128>}]} {
    %c0 = arith.constant 0 : index
    %c0_0 = arith.constant 0 : index
    %0 = vector.load %arg1[%c0, %c0_0] : memref<16x128xf32, #tpu.memory_space<vmem>>, vector<16x128xf32>
    %cst = arith.constant dense<0xFF800000> : vector<128xf32>
    %1 = vector.multi_reduction <maximumf>, %0, %cst [0] : vector<16x128xf32> to vector<128xf32>
    %2 = vector.shape_cast %1 : vector<128xf32> to vector<1x128xf32>
    %cst_1 = arith.constant dense<0x7F800000> : vector<128xf32>
    %3 = vector.multi_reduction <minimumf>, %0, %cst_1 [0] : vector<16x128xf32> to vector<128xf32>
    %4 = vector.shape_cast %3 : vector<128xf32> to vector<1x128xf32>
    %5 = arith.subf %2, %4 : vector<1x128xf32>
    %6 = tpu.reciprocal %5 : vector<1x128xf32> -> vector<1x128xf32>
    %7 = vector.broadcast %4 : vector<1x128xf32> to vector<16x128xf32>
    %8 = arith.subf %0, %7 : vector<16x128xf32>
    %9 = vector.broadcast %6 : vector<1x128xf32> to vector<16x128xf32>
    %10 = arith.mulf %8, %9 : vector<16x128xf32>
    %c0_2 = arith.constant 0 : index
    %c0_3 = arith.constant 0 : index
    %11 = vector.load %arg2[%c0_2, %c0_3] : memref<16x128xf32, #tpu.memory_space<vmem>>, vector<16x128xf32>
    tpu.vector_store %arg2[%c0_2, %c0_3], %10 {strides = array<i32>} : memref<16x128xf32, #tpu.memory_space<vmem>>, vector<16x128xf32>,
    return
  }
  func.func @transform_0(%arg0: i32) -> (i32, i32) {
    %c0_i32 = arith.constant 0 : i32
    %c0_i32_0 = arith.constant 0 : i32
    return %c0_i32, %arg0 : i32, i32
  }
  func.func @transform_1(%arg0: i32) -> (i32, i32) {
    %c0_i32 = arith.constant 0 : i32
    %c0_i32_0 = arith.constant 0 : i32
    return %c0_i32, %arg0 : i32, i32
  }
}

</mosaic_0001>

<bundles_post_ra>
// kernel: tpu_custom_call.1
= control target key start
LH: loop header
LB: loop body
LE: loop exit
PB: predicated region body
PF: predicated region fallthrough
CT: control target
= control target key end

     0   :  { %6 = vsyncpa [#allocation3], 0  ;;  %s162_s0 = inlined_call_operand.hbm [shape: f32[16,32], index: 0, kind: input, shape index: {}]   ;;  %s163_s1 = inlined_call_operand.hbm [shape: f32[16,32], index: 1, kind: output, shape index: {}]  }
   0x1   :  { %7 = vsyncpa [#allocation4], 0  ;;  %s118_s6 = smov [#allocation2]   ;;  %s70_s10 = scalar_lea.hbm %s162_s0, 256 }
   0x2   :  { %s13_s7 = sshll.u32 %s118_s6, 4  ;;  %p71_p0 = scmp.ne.s32.totalorder %s162_s0, %s70_s10  ;;  %s14_s7 = int_to_ptr.vmem [resolvable:$true] %s13_s7 }
   0x3   :  { %p74_p1 = scmp.lt.u32.totalorder %s70_s10, %s162_s0 }
   0x5   :  { %p76_p2 = pnand %p74_p1, %p71_p0 }
   0x7   :  { %79 = shalt.err (!%p76_p2)
}
   0x8   :  { %s80_s15 = scalar_lea.vmem %s14_s7, 256  ;;  %p85_p4 = scmp.lt.s32.totalorder %s14_s7, %s14_s7 }
   0x9   :  { %p81_p3 = scmp.ne.s32.totalorder %s14_s7, %s80_s15  ;;  %p86_p5 = scmp.lt.s32.totalorder %s80_s15, %s80_s15 }
   0xb   :  { %p87_p6 = por %p86_p5, %p85_p4 }
   0xd   :  { %p88_p7 = pnand %p87_p6, %p81_p3 }
   0xf   :  { %91 = shalt.err (!%p88_p7)
}
  0x10   :  { %s119_s16 = smov 128   ;;  %s120_s17 = smov 8  }
  0x11   :  { %19 = dma.hbm_to_vmem [thread:$0]  %s162_s0, 256, %s14_s7, [#allocation3], %s119_s16, %s119_s16, %s120_s17  }
  0x12   :  { %114 = dma.done.wait [#allocation3], 256  }
  0x13   :  { %115 = vsyncadd [#allocation3], 4294967040  ;;  %v23_v0 = vld [vmem:[#allocation2] sm:$0xff]  ;;  %v24_v1 = vld [vmem:[#allocation2 + $0x8] sm:$0xff]  ;;  %s121_s0 = smov [#allocation5]  }
  0x14   :  { %v25_v2 = vmax.f32 %v23_v0, %v24_v1  ;;  %v32_v3 = vmin.f32 %v23_v0, %v24_v1  ;;  %s52_s20 = sshll.u32 %s121_s0, 4  ;;  %s53_s20 = int_to_ptr.vmem [resolvable:$true] %s52_s20 }
  0x15   :  { %s92_s21 = scalar_lea.vmem %s53_s20, 256  ;;  %p97_p9 = scmp.lt.s32.totalorder %s53_s20, %s53_s20 }
  0x16   :  { %v26_v4 = vrot.slane %v25_v2, 4  ;;  %v33_v5 = vrot.slane %v32_v3, 4  ;;  %p93_p8 = scmp.ne.s32.totalorder %s53_s20, %s92_s21  ;;  %p98_p10 = scmp.lt.s32.totalorder %s92_s21, %s92_s21 }
  0x18   :  { %v27_v6 = vmax.f32 %v25_v2, %v26_v4  ;;  %v34_v7 = vmin.f32 %v32_v3, %v33_v5  ;;  %p99_p11 = por %p98_p10, %p97_p9 }
  0x1a   :  { %v28_v8 = vrot.slane %v27_v6, 2  ;;  %v35_v9 = vrot.slane %v34_v7, 2  ;;  %p100_p12 = pnand %p99_p11, %p93_p8 }
  0x1c   :  { %v29_v10 = vmax.f32 %v27_v6, %v28_v8  ;;  %v36_v11 = vmin.f32 %v34_v7, %v35_v9 }
  0x1e   :  { %v30_v12 = vrot.slane %v29_v10, 1  ;;  %v37_v13 = vrot.slane %v36_v11, 1 }
  0x20   :  { %v31_v14 = vmax.f32 %v29_v10, %v30_v12  ;;  %v38_v15 = vmin.f32 %v36_v11, %v37_v13 }
  0x22   :  { %v39_v16 = vsub.f32 %v31_v14, %v38_v15  ;;  %v41_v17 = vsub.f32 %v23_v0, %v38_v15  ;;  %v42_v18 = vsub.f32 %v24_v1, %v38_v15 }
  0x24   :  { %68 = vrcp.f32 %v39_v16 }
  0x2e   :  { %v69_v19 = vpop.eup %68 }
  0x2f   :  { %v43_v20 = vmul.f32 %v69_v19, %v41_v17  ;;  %v44_v21 = vmul.f32 %v69_v19, %v42_v18 }
  0x31   :  { %45 = vst [vmem:[#allocation5] sm:$0xff] %v43_v20  ;;  %46 = vst [vmem:[#allocation5 + $0x8] sm:$0xff] %v44_v21 }
  0x32   :  { %103 = shalt.err (!%p100_p12)
}
  0x33   :  { %s104_s24 = scalar_lea.hbm %s163_s1, 256 }
  0x34   :  { %p105_p13 = scmp.ne.s32.totalorder %s163_s1, %s104_s24  ;;  %p108_p0 = scmp.lt.u32.totalorder %s104_s24, %s163_s1 }
  0x36   :  { %p110_p1 = pnand %p108_p0, %p105_p13 }
  0x38   :  { %113 = shalt.err (!%p110_p1)
}
  0x39   :  { %58 = dma.vmem_to_hbm [thread:$0]  %s53_s20, 256, %s163_s1, [#allocation4], %s119_s16, %s119_s16, %s120_s17  }
  0x3a   :  { %116 = dma.done.wait [#allocation4], 256  }
  0x3b   :  { %117 = vsyncadd [#allocation4], 4294967040 }
  0x3c   :  { %62 = vsyncpa [#allocation3], 1 }
  0x3d   :  { %63 = vsyncpa [#allocation4], 1 }

</bundles_post_ra>
